<compile_context>
chip_gen: v7x
topology: tpu7x:2x2x1
jax: 0.10.0
libtpu: 0.0.40
codegen_flags: <defaults>
</compile_context>

<pallas_src>
import functools

import jax
import jax.numpy as jnp
import numpy as np
from jax.experimental import pallas as pl
from jax.experimental.pallas import tpu as pltpu

NEG_SLOPE = 0.01   # nn.LeakyReLU default slope
BN_EPS = 1e-5      # nn.BatchNorm default eps


# ----------------------------- Pallas kernels ------------------------------

def _conv_stack_kernel(xpad_ref, w1_ref, b1_ref, w2_ref, b2_ref,
                       o_ref, h1pad_ref, *, k, pad, H1, H2):
    """Fused conv1+BN1+LReLU+conv2+BN2+LReLU for one batch element.

    xpad_ref : (1, Hp1, Wp1*Cin)    zero-padded NHWC input, (W, C) flattened
    w1_ref   : (k, Wp1*Cin, Wp2*C1) banded conv1 weight (BN folded; output
                                    columns already W-padded for conv2)
    b1_ref   : (1, Wp2*C1)          folded bias (zero in padded columns)
    w2_ref   : (k, Wp2*C1, W2*C2)   banded conv2 weight (BN folded)
    b2_ref   : (1, W2*C2)
    o_ref    : (1, H2, W2*C2)
    h1pad_ref: VMEM scratch (Hp2, Wp2*C1) = H/W-padded conv1 activation
    """
    n1p = b1_ref.shape[1]
    n2 = b2_ref.shape[1]

    # conv1 as k row-banded GEMMs accumulated in registers.
    acc1 = jnp.zeros((H1, n1p), jnp.float32)
    for di in range(k):
        rows = xpad_ref[0, di:di + H1, :]                   # (H1, Wp1*Cin)
        acc1 = acc1 + jnp.dot(rows, w1_ref[di],
                              preferred_element_type=jnp.float32)
    z1 = acc1 + b1_ref[...]
    h1 = jnp.where(z1 >= 0, z1, NEG_SLOPE * z1)             # pad columns stay 0

    # Keep the H-padded conv1 activation in VMEM scratch (never leaves chip).
    h1pad_ref[...] = jnp.zeros_like(h1pad_ref)
    h1pad_ref[pad:pad + H1, :] = h1

    # conv2 with the same banded-GEMM trick.
    acc2 = jnp.zeros((H2, n2), jnp.float32)
    for di in range(k):
        rows = h1pad_ref[di:di + H2, :]                     # (H2, Wp2*C1)
        acc2 = acc2 + jnp.dot(rows, w2_ref[di],
                              preferred_element_type=jnp.float32)
    z2 = acc2 + b2_ref[...]
    o_ref[0] = jnp.where(z2 >= 0, z2, NEG_SLOPE * z2)       # (H2, W2*C2)


def _mlp_head_kernel(x_ref, w6_ref, b6_ref, w5_ref, b5_ref, wh_ref, bh_ref,
                     o_ref, *, n_reg, codebook_len):
    """Fused fc6 -> 4 branches -> 12 heads (+ per-branch softmax)."""
    # trunk: fc6 (+folded BN6) + LeakyReLU
    t = jnp.dot(x_ref[...], w6_ref[...],
                preferred_element_type=jnp.float32) + b6_ref[...]
    t = jnp.where(t >= 0, t, NEG_SLOPE * t)
    # all four branches fused into one lane-dense GEMM (N = 4*n_hidden)
    h = jnp.dot(t, w5_ref[...],
                preferred_element_type=jnp.float32) + b5_ref[...]
    h = jnp.where(h >= 0, h, NEG_SLOPE * h)
    # all twelve heads fused as one block-diagonal GEMM
    z = jnp.dot(h, wh_ref[...],
                preferred_element_type=jnp.float32) + bh_ref[...]

    n_ri = 8 * n_reg                      # [R1..R4 | I1..I4] passthrough
    o_ref[:, :n_ri] = z[:, :n_ri]
    off = n_ri
    for L in codebook_len:                # per-branch softmax heads
        seg = z[:, off:off + L]
        seg = seg - jnp.max(seg, axis=-1, keepdims=True)
        e = jnp.exp(seg)
        o_ref[:, off:off + L] = e * pl.reciprocal(
            jnp.sum(e, axis=-1, keepdims=True))
        off += L


# ----------------------------- kernel wrappers ------------------------------

def conv_stack(xpad, w1b, b1r, w2b, b2r, *, k, pad, H1, H2):
    B = xpad.shape[0]
    Hp2 = H1 + 2 * pad
    n1p = w1b.shape[2]
    n2 = w2b.shape[2]
    kernel = functools.partial(_conv_stack_kernel, k=k, pad=pad, H1=H1, H2=H2)
    return pl.pallas_call(
        kernel,
        out_shape=jax.ShapeDtypeStruct((B, H2, n2), jnp.float32),
        grid_spec=pltpu.PrefetchScalarGridSpec(
            num_scalar_prefetch=0,
            grid=(B,),
            in_specs=[
                pl.BlockSpec((1,) + xpad.shape[1:], lambda b: (b, 0, 0)),
                pl.BlockSpec(w1b.shape, lambda b: (0, 0, 0)),
                pl.BlockSpec(b1r.shape, lambda b: (0, 0)),
                pl.BlockSpec(w2b.shape, lambda b: (0, 0, 0)),
                pl.BlockSpec(b2r.shape, lambda b: (0, 0)),
            ],
            out_specs=pl.BlockSpec((1, H2, n2), lambda b: (b, 0, 0)),
            scratch_shapes=[pltpu.VMEM((Hp2, n1p), jnp.float32)],
        ),
        compiler_params=pltpu.CompilerParams(
            dimension_semantics=("parallel",)),
    )(xpad, w1b, b1r, w2b, b2r)


def mlp_heads(flat, w6, b6, w5, b5, wh, bh, *, n_reg, codebook_len):
    B = flat.shape[0]
    n_out = wh.shape[1]
    kernel = functools.partial(_mlp_head_kernel, n_reg=n_reg,
                               codebook_len=tuple(codebook_len))
    vmem = pl.BlockSpec(memory_space=pltpu.MemorySpace.VMEM)
    return pl.pallas_call(
        kernel,
        out_shape=jax.ShapeDtypeStruct((B, n_out), jnp.float32),
        in_specs=[vmem] * 7,
        out_specs=pl.BlockSpec(memory_space=pltpu.MemorySpace.VMEM),
    )(flat, w6, b6, w5, b5, wh, bh)


# --------------------- host-side parameter preparation ----------------------

def _fold_bn(gamma, beta, mean, var):
    scale = gamma / np.sqrt(var + BN_EPS)
    shift = beta - mean * scale
    return scale, shift


def _banded_conv(w, b, scale, shift, *, wp_in, w_out, col_pad):
    """Lower a stride-1 conv (+ folded BN) into k row-banded GEMM weights.

    Returns (k, wp_in*Cin, (w_out+2*col_pad)*Cout) weights and a matching
    (1, (w_out+2*col_pad)*Cout) bias row.  Columns for spatial positions in
    the col_pad margins are zero so the GEMM output is already W-padded for
    the next conv.
    """
    k, _, cin, cout = w.shape
    wf = w * scale[None, None, None, :]
    bf = b * scale + shift
    n_blk = w_out + 2 * col_pad
    wb = np.zeros((k, wp_in * cin, n_blk * cout), np.float32)
    br = np.zeros((n_blk * cout,), np.float32)
    for j in range(w_out):
        c0 = (j + col_pad) * cout
        br[c0:c0 + cout] = bf
        for di in range(k):
            for dj in range(k):
                r0 = (j + dj) * cin
                wb[di, r0:r0 + cin, c0:c0 + cout] = wf[di, dj]
    return wb, br.reshape(1, -1)


def prepare_kernel_params(p, cfg):
    """Fold BN/bias into weights, build banded conv weights, concatenate the
    branch weights and block-diagonalize the heads (host-side, done once)."""
    k, pad = cfg["kernel_s"], cfg["padding"]
    U, Ass = cfg["U"], cfg["Ass"]
    cch = cfg["out_channel"]
    n_hidden, n_reg = cfg["n_hidden"], cfg["n_out_Reg"]
    codebook_len = tuple(cfg["Codebook_len"])

    H1, W1 = U + 2 * pad - k + 1, Ass + 2 * pad - k + 1
    H2, W2 = H1 + 2 * pad - k + 1, W1 + 2 * pad - k + 1
    Wp1, Wp2 = Ass + 2 * pad, W1 + 2 * pad

    f = lambda a: np.asarray(a, np.float32)

    # conv1 / conv2 -> banded GEMM weights (BN folded)
    s1, h1 = _fold_bn(*[f(a) for a in p["bn1"]])
    w1b, b1r = _banded_conv(f(p["conv1_w"]), f(p["conv1_b"]), s1, h1,
                            wp_in=Wp1, w_out=W1, col_pad=pad)
    s2, h2 = _fold_bn(*[f(a) for a in p["bn2"]])
    w2b, b2r = _banded_conv(f(p["conv2_w"]), f(p["conv2_b"]), s2, h2,
                            wp_in=Wp2, w_out=W2, col_pad=0)

    # fc6: permute rows from PyTorch NCHW-flatten order to the conv kernel's
    # NHWC-flatten order, then fold BN6.
    s6, h6 = _fold_bn(*[f(a) for a in p["bn6"]])
    perm = np.zeros(cch * H2 * W2, np.int64)
    for i in range(H2):
        for j in range(W2):
            for o in range(cch):
                perm[(i * W2 + j) * cch + o] = (o * H2 + i) * W2 + j
    w6 = f(p["fc6_w"])[perm, :] * s6[None, :]
    b6 = f(p["fc6_b"]) * s6 + h6

    # fc51..fc54 concatenated into one (n_h8, 4*n_hidden) GEMM (BN5i folded)
    w5_blocks, b5_blocks = [], []
    for i in range(1, 5):
        s, h = _fold_bn(*[f(a) for a in p[f"bn5{i}"]])
        w5_blocks.append(f(p[f"fc5{i}_w"]) * s[None, :])
        b5_blocks.append(f(p[f"fc5{i}_b"]) * s + h)
    w5 = np.concatenate(w5_blocks, axis=1)
    b5 = np.concatenate(b5_blocks)

    # 12 heads as one block-diagonal GEMM: columns [R1..R4 | I1..I4 | C1..C4]
    n_cols = 8 * n_reg + int(sum(codebook_len))
    wh = np.zeros((4 * n_hidden, n_cols), np.float32)
    bh = np.zeros((n_cols,), np.float32)
    c_off = 8 * n_reg
    for i in range(4):
        r0 = i * n_hidden
        wh[r0:r0 + n_hidden, i * n_reg:(i + 1) * n_reg] = f(p[f"fc6{i+1}R_w"])
        bh[i * n_reg:(i + 1) * n_reg] = f(p[f"fc6{i+1}R_b"])
        ci = 4 * n_reg + i * n_reg
        wh[r0:r0 + n_hidden, ci:ci + n_reg] = f(p[f"fc6{i+1}I_w"])
        bh[ci:ci + n_reg] = f(p[f"fc6{i+1}I_b"])
        L = codebook_len[i]
        wh[r0:r0 + n_hidden, c_off:c_off + L] = f(p[f"fc9{i+1}C_w"])
        bh[c_off:c_off + L] = f(p[f"fc9{i+1}C_b"])
        c_off += L

    return dict(
        w1b=jnp.asarray(w1b), b1r=jnp.asarray(b1r),
        w2b=jnp.asarray(w2b), b2r=jnp.asarray(b2r),
        w6=jnp.asarray(w6), b6=jnp.asarray(b6).reshape(1, -1),
        w5=jnp.asarray(w5), b5=jnp.asarray(b5).reshape(1, -1),
        wh=jnp.asarray(wh), bh=jnp.asarray(bh).reshape(1, -1),
    )


# ----------------------------- forward pass ---------------------------------

def make_forward(cfg):
    k, pad = cfg["kernel_s"], cfg["padding"]
    U, Ass = cfg["U"], cfg["Ass"]
    n_reg = cfg["n_out_Reg"]
    codebook_len = tuple(cfg["Codebook_len"])
    H1 = U + 2 * pad - k + 1
    H2 = H1 + 2 * pad - k + 1

    @jax.jit
    def forward(kp, x_nchw):
        # NCHW -> NHWC, zero-pad, flatten (W, C) into the lane dimension.
        x = jnp.transpose(x_nchw, (0, 2, 3, 1))
        xpad = jnp.pad(x, ((0, 0), (pad, pad), (pad, pad), (0, 0)))
        B, Hp1, Wp1, Cin = xpad.shape
        xpad = xpad.reshape(B, Hp1, Wp1 * Cin)

        # Pallas call #1: fused conv1+BN1+LReLU+conv2+BN2+LReLU
        conv = conv_stack(xpad, kp["w1b"], kp["b1r"], kp["w2b"], kp["b2r"],
                          k=k, pad=pad, H1=H1, H2=H2)
        flat = conv.reshape(B, -1)   # NHWC flatten; fc6 rows were permuted

        # Pallas call #2: fused fc6 -> branches -> heads (+ softmax)
        head = mlp_heads(flat, kp["w6"], kp["b6"], kp["w5"], kp["b5"],
                         kp["wh"], kp["bh"],
                         n_reg=n_reg, codebook_len=codebook_len)

        n_r = 4 * n_reg
        outR = head[:, :n_r]
        outI = head[:, n_r:2 * n_r]
        outs_c = []
        off = 2 * n_r
        for L in codebook_len:
            outs_c.append(head[:, off:off + L])
            off += L
        return (outR, outI, *outs_c)

    return forward


# --------------------- pure-JAX reference (for checking) --------------------

def reference_forward(x_nchw, p, cfg):
    pad = cfg["padding"]
    hp = jax.lax.Precision.HIGHEST

    def lrelu(v):
        return jnp.where(v >= 0, v, NEG_SLOPE * v)

    def bn(v, gamma, beta, mean, var):
        return (v - mean) / jnp.sqrt(var + BN_EPS) * gamma + beta

    def conv(v, w, b):
        y = jax.lax.conv_general_dilated(
            v, w, (1, 1), [(pad, pad), (pad, pad)],
            dimension_numbers=("NHWC", "HWIO", "NHWC"), precision=hp)
        return y + b

    def fc(v, w, b):
        return jnp.dot(v, w, precision=hp) + b

    x = jnp.transpose(x_nchw, (0, 2, 3, 1))
    h = lrelu(bn(conv(x, p["conv1_w"], p["conv1_b"]), *p["bn1"]))
    h = lrelu(bn(conv(h, p["conv2_w"], p["conv2_b"]), *p["bn2"]))
    flat = jnp.transpose(h, (0, 3, 1, 2)).reshape(x.shape[0], -1)
    t = lrelu(bn(fc(flat, p["fc6_w"], p["fc6_b"]), *p["bn6"]))
    outs_r, outs_i, outs_c = [], [], []
    for i in range(1, 5):
        hb = lrelu(bn(fc(t, p[f"fc5{i}_w"], p[f"fc5{i}_b"]), *p[f"bn5{i}"]))
        outs_r.append(fc(hb, p[f"fc6{i}R_w"], p[f"fc6{i}R_b"]))
        outs_i.append(fc(hb, p[f"fc6{i}I_w"], p[f"fc6{i}I_b"]))
        outs_c.append(jax.nn.softmax(fc(hb, p[f"fc9{i}C_w"], p[f"fc9{i}C_b"]),
                                     axis=1))
    return (jnp.concatenate(outs_r, 1), jnp.concatenate(outs_i, 1), *outs_c)


# ----------------------------- param init -----------------------------------

def init_params(key, *, n_hidden, n_out_Reg, Codebook_len, U, Ass,
                out_channel, kernel_s, padding):
    keys = iter(jax.random.split(key, 96))

    def dense(n_in, n_out):
        lim = 1.0 / np.sqrt(float(n_in))
        w = jax.random.uniform(next(keys), (n_in, n_out), jnp.float32, -lim, lim)
        b = jax.random.uniform(next(keys), (n_out,), jnp.float32, -lim, lim)
        return w, b

    def conv(kh, kw, cin, cout):
        lim = 1.0 / np.sqrt(float(kh * kw * cin))
        w = jax.random.uniform(next(keys), (kh, kw, cin, cout), jnp.float32,
                               -lim, lim)
        b = jax.random.uniform(next(keys), (cout,), jnp.float32, -lim, lim)
        return w, b

    def bn(n):
        gamma = 1.0 + 0.1 * jax.random.normal(next(keys), (n,), jnp.float32)
        beta = 0.1 * jax.random.normal(next(keys), (n,), jnp.float32)
        mean = 0.1 * jax.random.normal(next(keys), (n,), jnp.float32)
        var = 1.0 + 0.05 * jax.random.uniform(next(keys), (n,), jnp.float32)
        return gamma, beta, mean, var

    k, pad = kernel_s, padding
    x_new = U + 2 * pad - k + 1
    y_new = Ass + 2 * pad - k + 1
    h2 = x_new + 2 * pad - k + 1
    w2 = y_new + 2 * pad - k + 1
    nn_in_fc = out_channel * h2 * w2
    n_h8 = int(n_hidden / 8)

    p = {}
    p["conv1_w"], p["conv1_b"] = conv(k, k, 4, out_channel)
    p["bn1"] = bn(out_channel)
    p["conv2_w"], p["conv2_b"] = conv(k, k, out_channel, out_channel)
    p["bn2"] = bn(out_channel)
    p["fc6_w"], p["fc6_b"] = dense(nn_in_fc, n_h8)
    p["bn6"] = bn(n_h8)
    for i in range(1, 5):
        p[f"fc5{i}_w"], p[f"fc5{i}_b"] = dense(n_h8, n_hidden)
        p[f"bn5{i}"] = bn(n_hidden)
        p[f"fc6{i}R_w"], p[f"fc6{i}R_b"] = dense(n_hidden, n_out_Reg)
        p[f"fc6{i}I_w"], p[f"fc6{i}I_b"] = dense(n_hidden, n_out_Reg)
        p[f"fc9{i}C_w"], p[f"fc9{i}C_b"] = dense(n_hidden, Codebook_len[i - 1])
    return p


# ----------------------------- main ------------------------------------------

if __name__ == "__main__":
    cfg = dict(
        n_hidden=64,
        n_out_Reg=4,
        Codebook_len=(8, 8, 8, 8),
        U=8,            # input height
        Ass=8,          # input width
        out_channel=8,
        kernel_s=3,
        padding=1,
    )
    batch = 4

    key = jax.random.PRNGKey(0)
    pkey, xkey = jax.random.split(key)
    params = init_params(pkey, **cfg)
    kparams = prepare_kernel_params(params, cfg)
    forward = make_forward(cfg)

    # PyTorch-style NCHW input: (B, 4, U, Ass)
    x = jax.random.normal(xkey, (batch, 4, cfg["U"], cfg["Ass"]), jnp.float32)

    outs = jax.block_until_ready(forward(kparams, x))
    refs = jax.block_until_ready(reference_forward(x, params, cfg))

    outR, outI, c1, c2, c3, c4 = outs
    assert outR.shape == (batch, 4 * cfg["n_out_Reg"]), outR.shape
    assert outI.shape == (batch, 4 * cfg["n_out_Reg"]), outI.shape
    for c, L in zip((c1, c2, c3, c4), cfg["Codebook_len"]):
        assert c.shape == (batch, L), c.shape
        assert bool(jnp.all(jnp.abs(jnp.sum(c, axis=1) - 1.0) < 1e-4))
    for o, r in zip(outs, refs):
        assert bool(jnp.all(jnp.isfinite(o)))
        assert bool(jnp.allclose(o, r, rtol=2e-2, atol=2e-2)), \
            float(jnp.max(jnp.abs(o - r)))

    print("KERNEL_OK")
</pallas_src>

<mosaic_0001>
module attributes {stable_mosaic.version = 11 : i64} {
  func.func @_conv_stack_kernel(%arg0: i32, %arg1: memref<1x10x40xf32, #tpu.memory_space<vmem>>, %arg2: memref<3x40x80xf32, #tpu.memory_space<vmem>>, %arg3: memref<1x80xf32, #tpu.memory_space<vmem>>, %arg4: memref<3x80x64xf32, #tpu.memory_space<vmem>>, %arg5: memref<1x64xf32, #tpu.memory_space<vmem>>, %arg6: memref<1x8x64xf32, #tpu.memory_space<vmem>>, %arg7: memref<10x80xf32, #tpu.memory_space<vmem>>) attributes {dimension_semantics = [#tpu.dimension_semantics<parallel>], iteration_bounds = array<i64: 4>, scalar_prefetch = 0 : i64, scratch_operands = 1 : i64, tpu.core_type = #tpu.core_type<tc>, window_params = [{transform_indices = @transform_0, window_bounds = array<i64: 1, 10, 40>}, {pipeline_mode = #tpu.pipeline_mode<synchronous>, transform_indices = @transform_1, window_bounds = array<i64: 3, 40, 80>}, {pipeline_mode = #tpu.pipeline_mode<synchronous>, transform_indices = @transform_2, window_bounds = array<i64: 1, 80>}, {pipeline_mode = #tpu.pipeline_mode<synchronous>, transform_indices = @transform_3, window_bounds = array<i64: 3, 80, 64>}, {pipeline_mode = #tpu.pipeline_mode<synchronous>, transform_indices = @transform_4, window_bounds = array<i64: 1, 64>}, {transform_indices = @transform_5, window_bounds = array<i64: 1, 8, 64>}]} {
    %cst = arith.constant 0.000000e+00 : f32
    %0 = vector.broadcast %cst : f32 to vector<8x80xf32>
    %c0 = arith.constant 0 : index
    %c0_0 = arith.constant 0 : index
    %c0_1 = arith.constant 0 : index
    %1 = vector.load %arg1[%c0, %c0_0, %c0_1] : memref<1x10x40xf32, #tpu.memory_space<vmem>>, vector<1x8x40xf32>
    %2 = vector.shape_cast %1 : vector<1x8x40xf32> to vector<8x40xf32>
    %c0_2 = arith.constant 0 : index
    %c0_3 = arith.constant 0 : index
    %c0_4 = arith.constant 0 : index
    %3 = vector.load %arg2[%c0_2, %c0_3, %c0_4] : memref<3x40x80xf32, #tpu.memory_space<vmem>>, vector<1x40x80xf32>
    %4 = vector.shape_cast %3 : vector<1x40x80xf32> to vector<40x80xf32>
    %cst_5 = arith.constant dense<0.000000e+00> : vector<8x80xf32>
    %5 = tpu.matmul %2, %4, %cst_5 {dimension_numbers = #tpu.dot_dimension_numbers<[1], [0], [0], [1], [0, 0, 1, 1], [], []>} : vector<8x40xf32>, vector<40x80xf32>, vector<8x80xf32> -> vector<8x80xf32>
    %6 = arith.addf %0, %5 : vector<8x80xf32>
    %c0_6 = arith.constant 0 : index
    %c1 = arith.constant 1 : index
    %c0_7 = arith.constant 0 : index
    %7 = vector.load %arg1[%c0_6, %c1, %c0_7] : memref<1x10x40xf32, #tpu.memory_space<vmem>>, vector<1x8x40xf32>
    %8 = vector.shape_cast %7 : vector<1x8x40xf32> to vector<8x40xf32>
    %c1_8 = arith.constant 1 : index
    %c0_9 = arith.constant 0 : index
    %c0_10 = arith.constant 0 : index
    %9 = vector.load %arg2[%c1_8, %c0_9, %c0_10] : memref<3x40x80xf32, #tpu.memory_space<vmem>>, vector<1x40x80xf32>
    %10 = vector.shape_cast %9 : vector<1x40x80xf32> to vector<40x80xf32>
    %cst_11 = arith.constant dense<0.000000e+00> : vector<8x80xf32>
    %11 = tpu.matmul %8, %10, %cst_11 {dimension_numbers = #tpu.dot_dimension_numbers<[1], [0], [0], [1], [0, 0, 1, 1], [], []>} : vector<8x40xf32>, vector<40x80xf32>, vector<8x80xf32> -> vector<8x80xf32>
    %12 = arith.addf %6, %11 : vector<8x80xf32>
    %c0_12 = arith.constant 0 : index
    %c2 = arith.constant 2 : index
    %c0_13 = arith.constant 0 : index
    %13 = vector.load %arg1[%c0_12, %c2, %c0_13] : memref<1x10x40xf32, #tpu.memory_space<vmem>>, vector<1x8x40xf32>
    %14 = vector.shape_cast %13 : vector<1x8x40xf32> to vector<8x40xf32>
    %c2_14 = arith.constant 2 : index
    %c0_15 = arith.constant 0 : index
    %c0_16 = arith.constant 0 : index
    %15 = vector.load %arg2[%c2_14, %c0_15, %c0_16] : memref<3x40x80xf32, #tpu.memory_space<vmem>>, vector<1x40x80xf32>
    %16 = vector.shape_cast %15 : vector<1x40x80xf32> to vector<40x80xf32>
    %cst_17 = arith.constant dense<0.000000e+00> : vector<8x80xf32>
    %17 = tpu.matmul %14, %16, %cst_17 {dimension_numbers = #tpu.dot_dimension_numbers<[1], [0], [0], [1], [0, 0, 1, 1], [], []>} : vector<8x40xf32>, vector<40x80xf32>, vector<8x80xf32> -> vector<8x80xf32>
    %18 = arith.addf %12, %17 : vector<8x80xf32>
    %c0_18 = arith.constant 0 : index
    %c0_19 = arith.constant 0 : index
    %19 = vector.load %arg3[%c0_18, %c0_19] : memref<1x80xf32, #tpu.memory_space<vmem>>, vector<1x80xf32>
    %20 = vector.broadcast %19 : vector<1x80xf32> to vector<8x80xf32>
    %21 = arith.addf %18, %20 : vector<8x80xf32>
    %cst_20 = arith.constant 0.000000e+00 : f32
    %22 = vector.broadcast %cst_20 : f32 to vector<8x80xf32>
    %23 = arith.cmpf oge, %21, %22 : vector<8x80xf32>
    %cst_21 = arith.constant 0.00999999977 : f32
    %24 = vector.broadcast %cst_21 : f32 to vector<8x80xf32>
    %25 = arith.mulf %24, %21 : vector<8x80xf32>
    %26 = arith.select %23, %21, %25 : vector<8x80xi1>, vector<8x80xf32>
    %cst_22 = arith.constant 0.000000e+00 : f32
    %27 = vector.broadcast %cst_22 : f32 to vector<10x80xf32>
    %c0_23 = arith.constant 0 : index
    %c0_24 = arith.constant 0 : index
    %28 = vector.load %arg7[%c0_23, %c0_24] : memref<10x80xf32, #tpu.memory_space<vmem>>, vector<10x80xf32>
    tpu.vector_store %arg7[%c0_23, %c0_24], %27 {strides = array<i32>} : memref<10x80xf32, #tpu.memory_space<vmem>>, vector<10x80xf32>,
    %c1_25 = arith.constant 1 : index
    %c0_26 = arith.constant 0 : index
    %29 = vector.load %arg7[%c1_25, %c0_26] : memref<10x80xf32, #tpu.memory_space<vmem>>, vector<8x80xf32>
    tpu.vector_store %arg7[%c1_25, %c0_26], %26 {strides = array<i32>} : memref<10x80xf32, #tpu.memory_space<vmem>>, vector<8x80xf32>,
    %cst_27 = arith.constant 0.000000e+00 : f32
    %30 = vector.broadcast %cst_27 : f32 to vector<8x64xf32>
    %c0_28 = arith.constant 0 : index
    %c0_29 = arith.constant 0 : index
    %31 = vector.load %arg7[%c0_28, %c0_29] : memref<10x80xf32, #tpu.memory_space<vmem>>, vector<8x80xf32>
    %c0_30 = arith.constant 0 : index
    %c0_31 = arith.constant 0 : index
    %c0_32 = arith.constant 0 : index
    %32 = vector.load %arg4[%c0_30, %c0_31, %c0_32] : memref<3x80x64xf32, #tpu.memory_space<vmem>>, vector<1x80x64xf32>
    %33 = vector.shape_cast %32 : vector<1x80x64xf32> to vector<80x64xf32>
    %cst_33 = arith.constant dense<0.000000e+00> : vector<8x64xf32>
    %34 = tpu.matmul %31, %33, %cst_33 {dimension_numbers = #tpu.dot_dimension_numbers<[1], [0], [0], [1], [0, 0, 1, 1], [], []>} : vector<8x80xf32>, vector<80x64xf32>, vector<8x64xf32> -> vector<8x64xf32>
    %35 = arith.addf %30, %34 : vector<8x64xf32>
    %c1_34 = arith.constant 1 : index
    %c0_35 = arith.constant 0 : index
    %36 = vector.load %arg7[%c1_34, %c0_35] : memref<10x80xf32, #tpu.memory_space<vmem>>, vector<8x80xf32>
    %c1_36 = arith.constant 1 : index
    %c0_37 = arith.constant 0 : index
    %c0_38 = arith.constant 0 : index
    %37 = vector.load %arg4[%c1_36, %c0_37, %c0_38] : memref<3x80x64xf32, #tpu.memory_space<vmem>>, vector<1x80x64xf32>
    %38 = vector.shape_cast %37 : vector<1x80x64xf32> to vector<80x64xf32>
    %cst_39 = arith.constant dense<0.000000e+00> : vector<8x64xf32>
    %39 = tpu.matmul %36, %38, %cst_39 {dimension_numbers = #tpu.dot_dimension_numbers<[1], [0], [0], [1], [0, 0, 1, 1], [], []>} : vector<8x80xf32>, vector<80x64xf32>, vector<8x64xf32> -> vector<8x64xf32>
    %40 = arith.addf %35, %39 : vector<8x64xf32>
    %c2_40 = arith.constant 2 : index
    %c0_41 = arith.constant 0 : index
    %41 = vector.load %arg7[%c2_40, %c0_41] : memref<10x80xf32, #tpu.memory_space<vmem>>, vector<8x80xf32>
    %c2_42 = arith.constant 2 : index
    %c0_43 = arith.constant 0 : index
    %c0_44 = arith.constant 0 : index
    %42 = vector.load %arg4[%c2_42, %c0_43, %c0_44] : memref<3x80x64xf32, #tpu.memory_space<vmem>>, vector<1x80x64xf32>
    %43 = vector.shape_cast %42 : vector<1x80x64xf32> to vector<80x64xf32>
    %cst_45 = arith.constant dense<0.000000e+00> : vector<8x64xf32>
    %44 = tpu.matmul %41, %43, %cst_45 {dimension_numbers = #tpu.dot_dimension_numbers<[1], [0], [0], [1], [0, 0, 1, 1], [], []>} : vector<8x80xf32>, vector<80x64xf32>, vector<8x64xf32> -> vector<8x64xf32>
    %45 = arith.addf %40, %44 : vector<8x64xf32>
    %c0_46 = arith.constant 0 : index
    %c0_47 = arith.constant 0 : index
    %46 = vector.load %arg5[%c0_46, %c0_47] : memref<1x64xf32, #tpu.memory_space<vmem>>, vector<1x64xf32>
    %47 = vector.broadcast %46 : vector<1x64xf32> to vector<8x64xf32>
    %48 = arith.addf %45, %47 : vector<8x64xf32>
    %cst_48 = arith.constant 0.000000e+00 : f32
    %49 = vector.broadcast %cst_48 : f32 to vector<8x64xf32>
    %50 = arith.cmpf oge, %48, %49 : vector<8x64xf32>
    %cst_49 = arith.constant 0.00999999977 : f32
    %51 = vector.broadcast %cst_49 : f32 to vector<8x64xf32>
    %52 = arith.mulf %51, %48 : vector<8x64xf32>
    %53 = arith.select %50, %48, %52 : vector<8x64xi1>, vector<8x64xf32>
    %c0_50 = arith.constant 0 : index
    %c0_51 = arith.constant 0 : index
    %c0_52 = arith.constant 0 : index
    %54 = vector.load %arg6[%c0_50, %c0_51, %c0_52] : memref<1x8x64xf32, #tpu.memory_space<vmem>>, vector<1x8x64xf32>
    %55 = vector.shape_cast %54 : vector<1x8x64xf32> to vector<8x64xf32>
    %56 = vector.shape_cast %53 : vector<8x64xf32> to vector<1x8x64xf32>
    tpu.vector_store %arg6[%c0_50, %c0_51, %c0_52], %56 {strides = array<i32>} : memref<1x8x64xf32, #tpu.memory_space<vmem>>, vector<1x8x64xf32>,
    return
  }
  func.func @transform_0(%arg0: i32) -> (i32, i32, i32) {
    %c0_i32 = arith.constant 0 : i32
    %c0_i32_0 = arith.constant 0 : i32
    %c0_i32_1 = arith.constant 0 : i32
    return %arg0, %c0_i32, %c0_i32_0 : i32, i32, i32
  }
  func.func @transform_1(%arg0: i32) -> (i32, i32, i32) {
    %c0_i32 = arith.constant 0 : i32
    %c0_i32_0 = arith.constant 0 : i32
    %c0_i32_1 = arith.constant 0 : i32
    %c0_i32_2 = arith.constant 0 : i32
    return %c0_i32, %c0_i32_0, %c0_i32_1 : i32, i32, i32
  }
  func.func @transform_2(%arg0: i32) -> (i32, i32) {
    %c0_i32 = arith.constant 0 : i32
    %c0_i32_0 = arith.constant 0 : i32
    %c0_i32_1 = arith.constant 0 : i32
    return %c0_i32, %c0_i32_0 : i32, i32
  }
  func.func @transform_3(%arg0: i32) -> (i32, i32, i32) {
    %c0_i32 = arith.constant 0 : i32
    %c0_i32_0 = arith.constant 0 : i32
    %c0_i32_1 = arith.constant 0 : i32
    %c0_i32_2 = arith.constant 0 : i32
    return %c0_i32, %c0_i32_0, %c0_i32_1 : i32, i32, i32
  }
  func.func @transform_4(%arg0: i32) -> (i32, i32) {
    %c0_i32 = arith.constant 0 : i32
    %c0_i32_0 = arith.constant 0 : i32
    %c0_i32_1 = arith.constant 0 : i32
    return %c0_i32, %c0_i32_0 : i32, i32
  }
  func.func @transform_5(%arg0: i32) -> (i32, i32, i32) {
    %c0_i32 = arith.constant 0 : i32
    %c0_i32_0 = arith.constant 0 : i32
    %c0_i32_1 = arith.constant 0 : i32
    return %arg0, %c0_i32, %c0_i32_0 : i32, i32, i32
  }
}

module attributes {stable_mosaic.version = 11 : i64} {
  func.func @_mlp_head_kernel(%arg0: memref<4x512xf32, #tpu.memory_space<vmem>>, %arg1: memref<512x8xf32, #tpu.memory_space<vmem>>, %arg2: memref<1x8xf32, #tpu.memory_space<vmem>>, %arg3: memref<8x256xf32, #tpu.memory_space<vmem>>, %arg4: memref<1x256xf32, #tpu.memory_space<vmem>>, %arg5: memref<256x64xf32, #tpu.memory_space<vmem>>, %arg6: memref<1x64xf32, #tpu.memory_space<vmem>>, %arg7: memref<4x64xf32, #tpu.memory_space<vmem>>) attributes {dimension_semantics = [], scalar_prefetch = 0 : i64, scratch_operands = 0 : i64, tpu.core_type = #tpu.core_type<tc>} {
    %c0 = arith.constant 0 : index
    %c0_0 = arith.constant 0 : index
    %0 = vector.load %arg0[%c0, %c0_0] : memref<4x512xf32, #tpu.memory_space<vmem>>, vector<4x512xf32>
    %c0_1 = arith.constant 0 : index
    %c0_2 = arith.constant 0 : index
    %1 = vector.load %arg1[%c0_1, %c0_2] : memref<512x8xf32, #tpu.memory_space<vmem>>, vector<512x8xf32>
    %cst = arith.constant dense<0.000000e+00> : vector<4x8xf32>
    %2 = tpu.matmul %0, %1, %cst {dimension_numbers = #tpu.dot_dimension_numbers<[1], [0], [0], [1], [0, 0, 1, 1], [], []>} : vector<4x512xf32>, vector<512x8xf32>, vector<4x8xf32> -> vector<4x8xf32>
    %c0_3 = arith.constant 0 : index
    %c0_4 = arith.constant 0 : index
    %3 = vector.load %arg2[%c0_3, %c0_4] : memref<1x8xf32, #tpu.memory_space<vmem>>, vector<1x8xf32>
    %4 = vector.broadcast %3 : vector<1x8xf32> to vector<4x8xf32>
    %5 = arith.addf %2, %4 : vector<4x8xf32>
    %cst_5 = arith.constant 0.000000e+00 : f32
    %6 = vector.broadcast %cst_5 : f32 to vector<4x8xf32>
    %7 = arith.cmpf oge, %5, %6 : vector<4x8xf32>
    %cst_6 = arith.constant 0.00999999977 : f32
    %8 = vector.broadcast %cst_6 : f32 to vector<4x8xf32>
    %9 = arith.mulf %8, %5 : vector<4x8xf32>
    %10 = arith.select %7, %5, %9 : vector<4x8xi1>, vector<4x8xf32>
    %c0_7 = arith.constant 0 : index
    %c0_8 = arith.constant 0 : index
    %11 = vector.load %arg3[%c0_7, %c0_8] : memref<8x256xf32, #tpu.memory_space<vmem>>, vector<8x256xf32>
    %cst_9 = arith.constant dense<0.000000e+00> : vector<4x256xf32>
    %12 = tpu.matmul %10, %11, %cst_9 {dimension_numbers = #tpu.dot_dimension_numbers<[1], [0], [0], [1], [0, 0, 1, 1], [], []>} : vector<4x8xf32>, vector<8x256xf32>, vector<4x256xf32> -> vector<4x256xf32>
    %c0_10 = arith.constant 0 : index
    %c0_11 = arith.constant 0 : index
    %13 = vector.load %arg4[%c0_10, %c0_11] : memref<1x256xf32, #tpu.memory_space<vmem>>, vector<1x256xf32>
    %14 = vector.broadcast %13 : vector<1x256xf32> to vector<4x256xf32>
    %15 = arith.addf %12, %14 : vector<4x256xf32>
    %cst_12 = arith.constant 0.000000e+00 : f32
    %16 = vector.broadcast %cst_12 : f32 to vector<4x256xf32>
    %17 = arith.cmpf oge, %15, %16 : vector<4x256xf32>
    %cst_13 = arith.constant 0.00999999977 : f32
    %18 = vector.broadcast %cst_13 : f32 to vector<4x256xf32>
    %19 = arith.mulf %18, %15 : vector<4x256xf32>
    %20 = arith.select %17, %15, %19 : vector<4x256xi1>, vector<4x256xf32>
    %c0_14 = arith.constant 0 : index
    %c0_15 = arith.constant 0 : index
    %21 = vector.load %arg5[%c0_14, %c0_15] : memref<256x64xf32, #tpu.memory_space<vmem>>, vector<256x64xf32>
    %cst_16 = arith.constant dense<0.000000e+00> : vector<4x64xf32>
    %22 = tpu.matmul %20, %21, %cst_16 {dimension_numbers = #tpu.dot_dimension_numbers<[1], [0], [0], [1], [0, 0, 1, 1], [], []>} : vector<4x256xf32>, vector<256x64xf32>, vector<4x64xf32> -> vector<4x64xf32>
    %c0_17 = arith.constant 0 : index
    %c0_18 = arith.constant 0 : index
    %23 = vector.load %arg6[%c0_17, %c0_18] : memref<1x64xf32, #tpu.memory_space<vmem>>, vector<1x64xf32>
    %24 = vector.broadcast %23 : vector<1x64xf32> to vector<4x64xf32>
    %25 = arith.addf %22, %24 : vector<4x64xf32>
    %26 = vector.extract_strided_slice %25 {offsets = [0, 0], sizes = [4, 32], strides = [1, 1]} : vector<4x64xf32> to vector<4x32xf32>
    %c0_19 = arith.constant 0 : index
    %c0_20 = arith.constant 0 : index
    %27 = vector.load %arg7[%c0_19, %c0_20] : memref<4x64xf32, #tpu.memory_space<vmem>>, vector<4x32xf32>
    tpu.vector_store %arg7[%c0_19, %c0_20], %26 {strides = array<i32>} : memref<4x64xf32, #tpu.memory_space<vmem>>, vector<4x32xf32>,
    %28 = vector.extract_strided_slice %25 {offsets = [0, 32], sizes = [4, 8], strides = [1, 1]} : vector<4x64xf32> to vector<4x8xf32>
    %cst_21 = arith.constant dense<0xFF800000> : vector<4xf32>
    %29 = vector.multi_reduction <maximumf>, %28, %cst_21 [1] : vector<4x8xf32> to vector<4xf32>
    %30 = vector.shape_cast %29 : vector<4xf32> to vector<4x1xf32>
    %31 = vector.broadcast %30 : vector<4x1xf32> to vector<4x8xf32>
    %32 = arith.subf %28, %31 : vector<4x8xf32>
    %33 = math.exp %32 : vector<4x8xf32>
    %cst_22 = arith.constant dense<0.000000e+00> : vector<4xf32>
    %34 = vector.multi_reduction <add>, %33, %cst_22 [1] : vector<4x8xf32> to vector<4xf32>
    %35 = vector.shape_cast %34 : vector<4xf32> to vector<4x1xf32>
    %36 = tpu.reciprocal %35 : vector<4x1xf32> -> vector<4x1xf32>
    %37 = vector.broadcast %36 : vector<4x1xf32> to vector<4x8xf32>
    %38 = arith.mulf %33, %37 : vector<4x8xf32>
    %c0_23 = arith.constant 0 : index
    %c32 = arith.constant 32 : index
    %39 = vector.load %arg7[%c0_23, %c32] : memref<4x64xf32, #tpu.memory_space<vmem>>, vector<4x8xf32>
    tpu.vector_store %arg7[%c0_23, %c32], %38 {strides = array<i32>} : memref<4x64xf32, #tpu.memory_space<vmem>>, vector<4x8xf32>,
    %40 = vector.extract_strided_slice %25 {offsets = [0, 40], sizes = [4, 8], strides = [1, 1]} : vector<4x64xf32> to vector<4x8xf32>
    %cst_24 = arith.constant dense<0xFF800000> : vector<4xf32>
    %41 = vector.multi_reduction <maximumf>, %40, %cst_24 [1] : vector<4x8xf32> to vector<4xf32>
    %42 = vector.shape_cast %41 : vector<4xf32> to vector<4x1xf32>
    %43 = vector.broadcast %42 : vector<4x1xf32> to vector<4x8xf32>
    %44 = arith.subf %40, %43 : vector<4x8xf32>
    %45 = math.exp %44 : vector<4x8xf32>
    %cst_25 = arith.constant dense<0.000000e+00> : vector<4xf32>
    %46 = vector.multi_reduction <add>, %45, %cst_25 [1] : vector<4x8xf32> to vector<4xf32>
    %47 = vector.shape_cast %46 : vector<4xf32> to vector<4x1xf32>
    %48 = tpu.reciprocal %47 : vector<4x1xf32> -> vector<4x1xf32>
    %49 = vector.broadcast %48 : vector<4x1xf32> to vector<4x8xf32>
    %50 = arith.mulf %45, %49 : vector<4x8xf32>
    %c0_26 = arith.constant 0 : index
    %c40 = arith.constant 40 : index
    %51 = vector.load %arg7[%c0_26, %c40] : memref<4x64xf32, #tpu.memory_space<vmem>>, vector<4x8xf32>
    tpu.vector_store %arg7[%c0_26, %c40], %50 {strides = array<i32>} : memref<4x64xf32, #tpu.memory_space<vmem>>, vector<4x8xf32>,
    %52 = vector.extract_strided_slice %25 {offsets = [0, 48], sizes = [4, 8], strides = [1, 1]} : vector<4x64xf32> to vector<4x8xf32>
    %cst_27 = arith.constant dense<0xFF800000> : vector<4xf32>
    %53 = vector.multi_reduction <maximumf>, %52, %cst_27 [1] : vector<4x8xf32> to vector<4xf32>
    %54 = vector.shape_cast %53 : vector<4xf32> to vector<4x1xf32>
    %55 = vector.broadcast %54 : vector<4x1xf32> to vector<4x8xf32>
    %56 = arith.subf %52, %55 : vector<4x8xf32>
    %57 = math.exp %56 : vector<4x8xf32>
    %cst_28 = arith.constant dense<0.000000e+00> : vector<4xf32>
    %58 = vector.multi_reduction <add>, %57, %cst_28 [1] : vector<4x8xf32> to vector<4xf32>
    %59 = vector.shape_cast %58 : vector<4xf32> to vector<4x1xf32>
    %60 = tpu.reciprocal %59 : vector<4x1xf32> -> vector<4x1xf32>
    %61 = vector.broadcast %60 : vector<4x1xf32> to vector<4x8xf32>
    %62 = arith.mulf %57, %61 : vector<4x8xf32>
    %c0_29 = arith.constant 0 : index
    %c48 = arith.constant 48 : index
    %63 = vector.load %arg7[%c0_29, %c48] : memref<4x64xf32, #tpu.memory_space<vmem>>, vector<4x8xf32>
    tpu.vector_store %arg7[%c0_29, %c48], %62 {strides = array<i32>} : memref<4x64xf32, #tpu.memory_space<vmem>>, vector<4x8xf32>,
    %64 = vector.extract_strided_slice %25 {offsets = [0, 56], sizes = [4, 8], strides = [1, 1]} : vector<4x64xf32> to vector<4x8xf32>
    %cst_30 = arith.constant dense<0xFF800000> : vector<4xf32>
    %65 = vector.multi_reduction <maximumf>, %64, %cst_30 [1] : vector<4x8xf32> to vector<4xf32>
    %66 = vector.shape_cast %65 : vector<4xf32> to vector<4x1xf32>
    %67 = vector.broadcast %66 : vector<4x1xf32> to vector<4x8xf32>
    %68 = arith.subf %64, %67 : vector<4x8xf32>
    %69 = math.exp %68 : vector<4x8xf32>
    %cst_31 = arith.constant dense<0.000000e+00> : vector<4xf32>
    %70 = vector.multi_reduction <add>, %69, %cst_31 [1] : vector<4x8xf32> to vector<4xf32>
    %71 = vector.shape_cast %70 : vector<4xf32> to vector<4x1xf32>
    %72 = tpu.reciprocal %71 : vector<4x1xf32> -> vector<4x1xf32>
    %73 = vector.broadcast %72 : vector<4x1xf32> to vector<4x8xf32>
    %74 = arith.mulf %69, %73 : vector<4x8xf32>
    %c0_32 = arith.constant 0 : index
    %c56 = arith.constant 56 : index
    %75 = vector.load %arg7[%c0_32, %c56] : memref<4x64xf32, #tpu.memory_space<vmem>>, vector<4x8xf32>
    tpu.vector_store %arg7[%c0_32, %c56], %74 {strides = array<i32>} : memref<4x64xf32, #tpu.memory_space<vmem>>, vector<4x8xf32>,
    return
  }
}

</mosaic_0001>

<bundles_post_ra>
// kernel: forward.3
= control target key start
LH: loop header
LB: loop body
LE: loop exit
PB: predicated region body
PF: predicated region fallthrough
CT: control target
= control target key end

     0   :  { %vm262_vm1 = vcmask 64512   ;;  %vm489_vm4 = vcmask 454016   ;;  %vm454_vm5 = vcmask 322816   ;;  %vm452_vm6 = vcmask 257024   ;;  %s756_s12 = smov 88   ;;  %s757_s13 = smov 80   ;;  %s1131_s1 = inlined_call_operand.vmem [shape: f32[512,8], index: 1, kind: input, shape index: {}]   ;;  %s1132_s0 = inlined_call_operand.vmem [shape: f32[4,512], index: 0, kind: input, shape index: {}]   ;;  %s1133_s3 = inlined_call_operand.vmem [shape: f32[8,256], index: 3, kind: input, shape index: {}]   ;;  %s1134_s5 = inlined_call_operand.vmem [shape: f32[256,64], index: 5, kind: input, shape index: {}]   ;;  %s1135_s2 = inlined_call_operand.vmem [shape: f32[1,8], index: 2, kind: input, shape index: {}]   ;;  %s1136_s4 = inlined_call_operand.vmem [shape: f32[1,256], index: 4, kind: input, shape index: {}]   ;;  %s1137_s6 = inlined_call_operand.vmem [shape: f32[1,64], index: 6, kind: input, shape index: {}]   ;;  %s1138_s7 = inlined_call_operand.vmem [shape: f32[4,64], index: 7, kind: output, shape index: {}]  }
   0x1   :  { %v44_v0 = vld [vmem:[%s1131_s1 + $0x80] sm:$0xff]  ;;  %v45_v1 = vld [vmem:[%s1131_s1 + $0x88] sm:$0xff]  ;;  %v46_v11 = vld [vmem:[%s1131_s1 + $0x90] sm:$0xff]  ;;  %vm506_vm7 = vcmask 519616   ;;  %vm472_vm8 = vcmask 388416   ;;  %s758_s14 = smov 72  }
   0x2   :  { %v28_v2 = vld [vmem:[%s1131_s1] sm:$0xff]  ;;  %v635_v3 = vpack.c.bf16 %v45_v1, %v44_v0  ;;  %v29_v4 = vld [vmem:[%s1131_s1 + $0x8] sm:$0xff]  ;;  %v47_v13 = vld [vmem:[%s1131_s1 + $0x98] sm:$0xff]  ;;  %vm465_vm9 = vcmask 60416  }
   0x3   :  { %v76_v5 = vld [vmem:[%s1131_s1 + $0x180] sm:$0xff]  ;;  %v77_v6 = vld [vmem:[%s1131_s1 + $0x188] sm:$0xff]  ;;  %v637_v7 = vpack.c.bf16 %v29_v4, %v28_v2  ;;  %v30_v14 = vld [vmem:[%s1131_s1 + $0x10] sm:$0xff]  ;;  %v639_v16 = vpack.c.bf16 %v47_v13, %v46_v11 }
   0x4   :  { %v667_v8 = vpack.c.bf16 %v77_v6, %v76_v5  ;;  %v60_v9 = vld [vmem:[%s1131_s1 + $0x100] sm:$0xff]  ;;  %v61_v10 = vld [vmem:[%s1131_s1 + $0x108] sm:$0xff]  ;;  %636 = vmatprep.subr.bf16.mxu0 %v635_v3  ;;  %v31_v15 = vld [vmem:[%s1131_s1 + $0x18] sm:$0xff] }
   0x5   :  { %v669_v12 = vpack.c.bf16 %v61_v10, %v60_v9  ;;  %638 = vmatpush3.bf16.msra.mxu0 %v637_v7  ;;  %v641_v17 = vpack.c.bf16 %v31_v15, %v30_v14  ;;  %v78_v18 = vld [vmem:[%s1131_s1 + $0x190] sm:$0xff]  ;;  %v79_v19 = vld [vmem:[%s1131_s1 + $0x198] sm:$0xff]  ;;  %v48_v23 = vld [vmem:[%s1131_s1 + $0xa0] sm:$0xff] }
   0x6   :  { %668 = vmatprep.subr.bf16.mxu1 %v667_v8  ;;  %v62_v20 = vld [vmem:[%s1131_s1 + $0x110] sm:$0xff]  ;;  %v671_v21 = vpack.c.bf16 %v79_v19, %v78_v18  ;;  %v63_v22 = vld [vmem:[%s1131_s1 + $0x118] sm:$0xff]  ;;  %v49_v24 = vld [vmem:[%s1131_s1 + $0xa8] sm:$0xff]  ;;  %640 = vmatprep.subr.bf16.mxu0 %v639_v16 }
   0x7   :  { %670 = vmatpush3.bf16.msra.mxu1 %v669_v12  ;;  %v673_v25 = vpack.c.bf16 %v63_v22, %v62_v20  ;;  %v643_v26 = vpack.c.bf16 %v49_v24, %v48_v23  ;;  %v32_v27 = vld [vmem:[%s1131_s1 + $0x20] sm:$0xff]  ;;  %v33_v28 = vld [vmem:[%s1131_s1 + $0x28] sm:$0xff]  ;;  %v50_v35 = vld [vmem:[%s1131_s1 + $0xb0] sm:$0xff] }
   0x8   :  { %v80_v29 = vld [vmem:[%s1131_s1 + $0x1a0] sm:$0xff]  ;;  %672 = vmatprep.subr.bf16.mxu1 %v671_v21  ;;  %v81_v30 = vld [vmem:[%s1131_s1 + $0x1a8] sm:$0xff]  ;;  %v645_v33 = vpack.c.bf16 %v33_v28, %v32_v27  ;;  %v51_v36 = vld [vmem:[%s1131_s1 + $0xb8] sm:$0xff] }
   0x9   :  { %v64_v31 = vld [vmem:[%s1131_s1 + $0x120] sm:$0xff]  ;;  %v65_v32 = vld [vmem:[%s1131_s1 + $0x128] sm:$0xff]  ;;  %642 = vmatpush3.bf16.msra.mxu0 %v641_v17  ;;  %v675_v34 = vpack.c.bf16 %v81_v30, %v80_v29  ;;  %v34_v37 = vld [vmem:[%s1131_s1 + $0x30] sm:$0xff]  ;;  %v647_v39 = vpack.c.bf16 %v51_v36, %v50_v35 }
   0xa   :  { %644 = vmatprep.subr.bf16.mxu0 %v643_v26  ;;  %v677_v38 = vpack.c.bf16 %v65_v32, %v64_v31  ;;  %v35_v40 = vld [vmem:[%s1131_s1 + $0x38] sm:$0xff]  ;;  %v82_v41 = vld [vmem:[%s1131_s1 + $0x1b0] sm:$0xff]  ;;  %v52_v46 = vld [vmem:[%s1131_s1 + $0xc0] sm:$0xff] }
   0xb   :  { %674 = vmatpush3.bf16.msra.mxu1 %v673_v25  ;;  %v83_v42 = vld [vmem:[%s1131_s1 + $0x1b8] sm:$0xff]  ;;  %v66_v44 = vld [vmem:[%s1131_s1 + $0x130] sm:$0xff]  ;;  %v53_v47 = vld [vmem:[%s1131_s1 + $0xc8] sm:$0xff]  ;;  %v649_v48 = vpack.c.bf16 %v35_v40, %v34_v37 }
   0xc   :  { %676 = vmatprep.subr.bf16.mxu1 %v675_v34  ;;  %v679_v43 = vpack.c.bf16 %v83_v42, %v82_v41  ;;  %v67_v45 = vld [vmem:[%s1131_s1 + $0x138] sm:$0xff]  ;;  %v84_v49 = vld [vmem:[%s1131_s1 + $0x1c0] sm:$0xff]  ;;  %v85_v50 = vld [vmem:[%s1131_s1 + $0x1c8] sm:$0xff]  ;;  %v651_v52 = vpack.c.bf16 %v53_v47, %v52_v46 }
   0xd   :  { %646 = vmatpush3.bf16.msra.mxu0 %v645_v33  ;;  %v681_v51 = vpack.c.bf16 %v67_v45, %v66_v44  ;;  %v36_v53 = vld [vmem:[%s1131_s1 + $0x40] sm:$0xff]  ;;  %v37_v54 = vld [vmem:[%s1131_s1 + $0x48] sm:$0xff]  ;;  %v683_v56 = vpack.c.bf16 %v85_v50, %v84_v49  ;;  %v54_v58 = vld [vmem:[%s1131_s1 + $0xd0] sm:$0xff] }
   0xe   :  { %648 = vmatprep.subr.bf16.mxu0 %v647_v39  ;;  %v68_v55 = vld [vmem:[%s1131_s1 + $0x140] sm:$0xff]  ;;  %v69_v57 = vld [vmem:[%s1131_s1 + $0x148] sm:$0xff]  ;;  %v55_v59 = vld [vmem:[%s1131_s1 + $0xd8] sm:$0xff]  ;;  %v653_v62 = vpack.c.bf16 %v37_v54, %v36_v53 }
   0xf   :  { %678 = vmatpush3.bf16.msra.mxu1 %v677_v38  ;;  %v86_v60 = vld [vmem:[%s1131_s1 + $0x1d0] sm:$0xff]  ;;  %v87_v61 = vld [vmem:[%s1131_s1 + $0x1d8] sm:$0xff]  ;;  %v685_v63 = vpack.c.bf16 %v69_v57, %v68_v55  ;;  %v655_v0 = vpack.c.bf16 %v55_v59, %v54_v58  ;;  %v56_v6 = vld [vmem:[%s1131_s1 + $0xe0] sm:$0xff]  ;;  %v754_v38 = vmov 0.0  }
  0x10   :  { %680 = vmatprep.subr.bf16.mxu1 %v679_v43  ;;  %v38_v1 = vld [vmem:[%s1131_s1 + $0x50] sm:$0xff]  ;;  %v39_v2 = vld [vmem:[%s1131_s1 + $0x58] sm:$0xff]  ;;  %v687_v4 = vpack.c.bf16 %v87_v61, %v86_v60  ;;  %v57_v7 = vld [vmem:[%s1131_s1 + $0xe8] sm:$0xff] }
  0x11   :  { %650 = vmatpush3.bf16.msra.mxu0 %v649_v48  ;;  %v70_v3 = vld [vmem:[%s1131_s1 + $0x150] sm:$0xff]  ;;  %v71_v5 = vld [vmem:[%s1131_s1 + $0x158] sm:$0xff]  ;;  %v88_v8 = vld [vmem:[%s1131_s1 + $0x1e0] sm:$0xff]  ;;  %v657_v10 = vpack.c.bf16 %v39_v2, %v38_v1  ;;  %v659_v14 = vpack.c.bf16 %v57_v7, %v56_v6 }
  0x12   :  { %652 = vmatprep.subr.bf16.mxu0 %v651_v52  ;;  %v89_v9 = vld [vmem:[%s1131_s1 + $0x1e8] sm:$0xff]  ;;  %v40_v11 = vld [vmem:[%s1131_s1 + $0x60] sm:$0xff]  ;;  %v689_v13 = vpack.c.bf16 %v71_v5, %v70_v3  ;;  %v58_v20 = vld [vmem:[%s1131_s1 + $0xf0] sm:$0xff] }
  0x13   :  { %682 = vmatpush3.bf16.msra.mxu1 %v681_v51  ;;  %v41_v12 = vld [vmem:[%s1131_s1 + $0x68] sm:$0xff]  ;;  %v72_v15 = vld [vmem:[%s1131_s1 + $0x160] sm:$0xff]  ;;  %v691_v18 = vpack.c.bf16 %v89_v9, %v88_v8  ;;  %v59_v21 = vld [vmem:[%s1131_s1 + $0xf8] sm:$0xff] }
  0x14   :  { %684 = vmatprep.subr.bf16.mxu1 %v683_v56  ;;  %v26_v16 = vld [vmem:[%s1132_s0] sm:$0xff]  ;;  %v27_v17 = vld [vmem:[%s1132_s0 + $0x8] sm:$0xff]  ;;  %v90_v24 = vld [vmem:[%s1131_s1 + $0x1f0] sm:$0xff]  ;;  %v661_v26 = vpack.c.bf16 %v41_v12, %v40_v11  ;;  %v663_v28 = vpack.c.bf16 %v59_v21, %v58_v20 }
  0x15   :  { %654 = vmatpush3.bf16.msra.mxu0 %v653_v62  ;;  %v73_v19 = vld [vmem:[%s1131_s1 + $0x168] sm:$0xff]  ;;  %v101_v22 = vcombine.high %v26_v16, %v26_v16  ;;  %v102_v23 = vcombine.high %v27_v17, %v27_v17  ;;  %v91_v25 = vld [vmem:[%s1131_s1 + $0x1f8] sm:$0xff]  ;;  %v42_v29 = vld [vmem:[%s1131_s1 + $0x70] sm:$0xff] }
  0x16   :  { %656 = vmatprep.subr.bf16.mxu0 %v655_v0  ;;  %v693_v27 = vpack.c.bf16 %v73_v19, %v72_v15  ;;  %v43_v30 = vld [vmem:[%s1131_s1 + $0x78] sm:$0xff]  ;;  %v695_v31 = vpack.c.bf16 %v91_v25, %v90_v24  ;;  %v74_v32 = vld [vmem:[%s1131_s1 + $0x170] sm:$0xff]  ;;  %v249_v36 = vld [vmem:[%s1133_s3 + $0x8] sm:$0xff] }
  0x17   :  { %686 = vmatpush3.bf16.msra.mxu1 %v685_v63  ;;  %169 = vmatprep.mubr.f32.mxu0 %v101_v22  ;;  %v75_v33 = vld [vmem:[%s1131_s1 + $0x178] sm:$0xff]  ;;  %v665_v34 = vpack.c.bf16 %v43_v30, %v42_v29  ;;  %v248_v37 = vld [vmem:[%s1133_s3] sm:$0xff]  ;;  %v360_v40 = vld [vmem:[%s1134_s5 + $0x88] sm:$0xff] }
  0x18   :  { %688 = vmatprep.subr.bf16.mxu1 %v687_v4  ;;  %239 = vmatprep.mubr.f32.mxu1 %v102_v23  ;;  %v697_v35 = vpack.c.bf16 %v75_v33, %v74_v32  ;;  %v359_v39 = vld [vmem:[%s1134_s5 + $0x80] sm:$0xff]  ;;  %v344_v43 = vld [vmem:[%s1134_s5 + $0x8] sm:$0xff]  ;;  %v361_v44 = vld [vmem:[%s1134_s5 + $0x90] sm:$0xff] }
  0x19   :  { %658 = vmatpush3.bf16.msra.mxu0 %v657_v10  ;;  %v343_v41 = vld [vmem:[%s1134_s5] sm:$0xff]  ;;  %v699_v42 = vpack.c.bf16 %v360_v40, %v359_v39  ;;  %v362_v45 = vld [vmem:[%s1134_s5 + $0x98] sm:$0xff]  ;;  %v345_v48 = vld [vmem:[%s1134_s5 + $0x10] sm:$0xff] }
  0x1a   :  { %660 = vmatprep.subr.bf16.mxu0 %v659_v14  ;;  %v701_v46 = vpack.c.bf16 %v344_v43, %v343_v41  ;;  %v703_v47 = vpack.c.bf16 %v362_v45, %v361_v44  ;;  %v346_v49 = vld [vmem:[%s1134_s5 + $0x18] sm:$0xff]  ;;  %v363_v50 = vld [vmem:[%s1134_s5 + $0xa0] sm:$0xff]  ;;  %v364_v51 = vld [vmem:[%s1134_s5 + $0xa8] sm:$0xff] }
  0x1b   :  { %690 = vmatpush3.bf16.msra.mxu1 %v689_v13  ;;  %v705_v52 = vpack.c.bf16 %v346_v49, %v345_v48  ;;  %v707_v53 = vpack.c.bf16 %v364_v51, %v363_v50  ;;  %v347_v54 = vld [vmem:[%s1134_s5 + $0x20] sm:$0xff]  ;;  %v348_v55 = vld [vmem:[%s1134_s5 + $0x28] sm:$0xff]  ;;  %v365_v56 = vld [vmem:[%s1134_s5 + $0xb0] sm:$0xff] }
  0x1c   :  { %692 = vmatprep.subr.bf16.mxu1 %v691_v18  ;;  %v366_v57 = vld [vmem:[%s1134_s5 + $0xb8] sm:$0xff]  ;;  %v709_v58 = vpack.c.bf16 %v348_v55, %v347_v54  ;;  %v349_v60 = vld [vmem:[%s1134_s5 + $0x30] sm:$0xff]  ;;  %v367_v62 = vld [vmem:[%s1134_s5 + $0xc0] sm:$0xff] }
  0x1d   :  { %662 = vmatpush3.bf16.msra.mxu0 %v661_v26  ;;  %v711_v59 = vpack.c.bf16 %v366_v57, %v365_v56  ;;  %v350_v61 = vld [vmem:[%s1134_s5 + $0x38] sm:$0xff]  ;;  %v368_v63 = vld [vmem:[%s1134_s5 + $0xc8] sm:$0xff]  ;;  %v351_v2 = vld [vmem:[%s1134_s5 + $0x40] sm:$0xff] }
  0x1e   :  { %664 = vmatprep.subr.bf16.mxu0 %v663_v28  ;;  %v713_v0 = vpack.c.bf16 %v350_v61, %v349_v60  ;;  %v715_v1 = vpack.c.bf16 %v368_v63, %v367_v62  ;;  %v352_v3 = vld [vmem:[%s1134_s5 + $0x48] sm:$0xff]  ;;  %v369_v4 = vld [vmem:[%s1134_s5 + $0xd0] sm:$0xff]  ;;  %v370_v5 = vld [vmem:[%s1134_s5 + $0xd8] sm:$0xff] }
  0x1f   :  { %694 = vmatpush3.bf16.msra.mxu1 %v693_v27  ;;  %v717_v6 = vpack.c.bf16 %v352_v3, %v351_v2  ;;  %v719_v7 = vpack.c.bf16 %v370_v5, %v369_v4  ;;  %v353_v8 = vld [vmem:[%s1134_s5 + $0x50] sm:$0xff]  ;;  %v354_v9 = vld [vmem:[%s1134_s5 + $0x58] sm:$0xff]  ;;  %v527_v12 = vld [vmem:[%s1135_s2] ss:$0 sm:$0xff] }
  0x20   :  { %696 = vmatprep.subr.bf16.mxu1 %v695_v31  ;;  %v721_v10 = vpack.c.bf16 %v354_v9, %v353_v8  ;;  %v371_v22 = vld [vmem:[%s1134_s5 + $0xe0] sm:$0xff]  ;;  %v372_v23 = vld [vmem:[%s1134_s5 + $0xe8] sm:$0xff]  ;;  %v373_v28 = vld [vmem:[%s1134_s5 + $0xf0] sm:$0xff] }
  0x21   :  { %666 = vmatpush3.bf16.msra.mxu0 %v665_v34  ;;  %v723_v24 = vpack.c.bf16 %v372_v23, %v371_v22  ;;  %v355_v25 = vld [vmem:[%s1134_s5 + $0x60] sm:$0xff]  ;;  %v356_v26 = vld [vmem:[%s1134_s5 + $0x68] sm:$0xff]  ;;  %v374_v29 = vld [vmem:[%s1134_s5 + $0xf8] sm:$0xff]  ;;  %v252_v34 = vlaneseq }
  0x22   :  { %266 = vmatprep.subr.mxu0 %v249_v36  ;;  %v725_v27 = vpack.c.bf16 %v356_v26, %v355_v25  ;;  %v727_v30 = vpack.c.bf16 %v374_v29, %v373_v28  ;;  %v357_v31 = vld [vmem:[%s1134_s5 + $0x70] sm:$0xff]  ;;  %v358_v32 = vld [vmem:[%s1134_s5 + $0x78] sm:$0xff]  ;;  %v529_v50 = vld [vmem:[%s1137_s6] ss:$0 sm:$0xff]  ;;  %s755_s6 = smov 96  }
  0x23   :  { %698 = vmatpush3.bf16.msra.mxu1 %v697_v35  ;;  %v729_v33 = vpack.c.bf16 %v358_v32, %v357_v31  ;;  %v253_v35 = vshrl.u32 %v252_v34, 7 }
  0x24   :  { %170 = vmatmul.mubr.f32.vlgmr.msra.gmra.mrb[0].mxu0 %v26_v16  ;;  %700 = vmatprep.subr.bf16.mxu1 %v699_v42 }
  0x25   :  { %330 = vmatprep.mubr.f32.mxu0 %v754_v38  ;;  %267 = vmatpush1.msra.mxu0 %v248_v37  ;;  %v254_v36 = vsub.s32 0, %v253_v35  ;;  %v250_v37 = vld [vmem:[%s1136_s4] sm:$0x3]  ;;  %v258_v38 = vsub.s32 1, %v253_v35 }
  0x26   :  { %240 = vmatmul.mubr.f32.vlgmr.msra.gmra.mrb[0].mxu1 %v27_v17 }
  0x27   :  { %702 = vmatpush3.bf16.msra.mxu1 %v701_v46  ;;  %v255_v39 = vrot.slane %v250_v37, %v254_v36  ;;  %v259_v40 = vrot.slane %v250_v37, %v258_v38 }
  0x28   :  { %704 = vmatprep.subr.bf16.mxu1 %v703_v47 }
  0x2b   :  { %706 = vmatpush3.bf16.msra.mxu1 %v705_v52 }
  0x2c   :  { %708 = vmatprep.subr.bf16.mxu1 %v707_v53 }
  0x2f   :  { %710 = vmatpush3.bf16.msra.mxu1 %v709_v58 }
  0x30   :  { %712 = vmatprep.subr.bf16.mxu1 %v711_v59 }
  0x33   :  { %714 = vmatpush3.bf16.msra.mxu1 %v713_v0 }
  0x34   :  { %716 = vmatprep.subr.bf16.mxu1 %v715_v1 }
  0x37   :  { %718 = vmatpush3.bf16.msra.mxu1 %v717_v6 }
  0x38   :  { %720 = vmatprep.subr.bf16.mxu1 %v719_v7 }
  0x3b   :  { %722 = vmatpush3.bf16.msra.mxu1 %v721_v10 }
  0x3c   :  { %724 = vmatprep.subr.bf16.mxu1 %v723_v24 }
  0x3f   :  { %726 = vmatpush3.bf16.msra.mxu1 %v725_v27 }
  0x40   :  { %728 = vmatprep.subr.bf16.mxu1 %v727_v30 }
  0x43   :  { %730 = vmatpush3.bf16.msra.mxu1 %v729_v33 }
  0xf7   :  { %v562_v11 = vpop.f32.mrb[0].mxu0 }
  0xf8   :  { %v563_v13 = vpop.f32.mrb[1].mxu0 }
  0xf9   :  { %v597_v14 = vpop.f32.mrb[0].mxu1  ;;  %v564_v15 = vadd.f32 %v563_v13, %v562_v11 }
  0xfa   :  { %v598_v16 = vpop.f32.mrb[1].mxu1 }
  0xfb   :  { %v599_v17 = vadd.f32 %v598_v16, %v597_v14  ;;  %v172_v18 = vadd.f32 %v564_v15, %v527_v12 }
  0xfd   :  { %v242_v19 = vadd.f32 %v599_v17, %v172_v18 }
  0xff   :  { %vm245_vm0 = vcmp.ge.f32.partialorder %v242_v19, 0.0  ;;  %v246_v20 = vmul.f32 0.01, %v242_v19 }
 0x101   :  { %v247_v21 = vsel %vm245_vm0, %v242_v19, %v246_v20 }
 0x102   :  { %528 = vmatmul.mubr.msk.f32.vlgmr.msra.gmra.mrb[2].mxu0 %vm262_vm1, %v247_v21 }
 0x1d5   :  { %v332_v41 = vpop.f32.mrb[2].mxu0 }
 0x1d6   :  { %v333_v42 = vadd.f32 %v332_v41, %v255_v39  ;;  %v334_v43 = vpop.f32.mrb[3].mxu0 }
 0x1d7   :  { %v335_v44 = vadd.f32 %v334_v43, %v259_v40 }
 0x1d8   :  { %v339_v45 = vmul.f32 0.01, %v333_v42  ;;  %vm337_vm2 = vcmp.ge.f32.partialorder %v333_v42, 0.0 }
 0x1d9   :  { %v340_v46 = vmul.f32 0.01, %v335_v44  ;;  %vm338_vm3 = vcmp.ge.f32.partialorder %v335_v44, 0.0 }
 0x1da   :  { %v341_v48 = vsel %vm337_vm2, %v333_v42, %v339_v45 }
 0x1db   :  { %v342_v47 = vsel %vm338_vm3, %v335_v44, %v340_v46 }
 0x1dc   :  { %446 = vmatprep.mubr.f32.mxu1 %v342_v47 }
 0x1dd   :  { %447 = vmatmul.mubr.f32.vlgmr.msra.gmra.mrb[2].mxu1 %v341_v48 }
 0x2b0   :  { %v632_v49 = vpop.f32.mrb[2].mxu1 }
 0x2b1   :  { %v633_v51 = vpop.f32.mrb[3].mxu1 }
 0x2b2   :  { %v634_v52 = vadd.f32 %v633_v51, %v632_v49 }
 0x2b4   :  { %v449_v53 = vadd.f32 %v634_v52, %v529_v50 }
 0x2b6   :  { %v490_v54 = vsel %vm489_vm4, %v449_v53, -inf  ;;  %v455_v55 = vsel %vm454_vm5, %v449_v53, -inf  ;;  %453 = vst.msk [vmem:[%s1138_s7] sm:$0xf] %vm452_vm6, %v449_v53  ;;  %v507_v56 = vsel %vm506_vm7, %v449_v53, -inf  ;;  %v473_v57 = vsel %vm472_vm8, %v449_v53, -inf }
 0x2b7   :  { %491 = vmax.xlane.f32.xlu1 %v490_v54  ;;  %456 = vmax.xlane.f32.xlu0 %v455_v55 }
 0x2bb   :  { %508 = vmax.xlane.f32.xlu1 %v507_v56  ;;  %474 = vmax.xlane.f32.xlu0 %v473_v57 }
 0x344   :  { %v457_v58 = vpop.xlane.xlu0 %456  ;;  %v492_v59 = vpop.xlane.xlu1 %491 }
 0x345   :  { %v458_v60 = vsub.f32 %v449_v53, %v457_v58  ;;  %v493_v0 = vsub.f32 %v449_v53, %v492_v59 }
 0x347   :  { %v459_v61 = vmul.f32 1.442695, %v458_v60  ;;  %v494_v3 = vmul.f32 1.442695, %v493_v0 }
 0x348   :  { %v475_v62 = vpop.xlane.xlu0 %474  ;;  %v509_v1 = vpop.xlane.xlu1 %508 }
 0x349   :  { %v476_v63 = vsub.f32 %v449_v53, %v475_v62  ;;  %738 = vpow2.f32 %v459_v61  ;;  %v510_v4 = vsub.f32 %v449_v53, %v509_v1 }
 0x34b   :  { %v477_v2 = vmul.f32 1.442695, %v476_v63  ;;  %v511_v5 = vmul.f32 1.442695, %v510_v4 }
 0x34d   :  { %740 = vpow2.f32 %v477_v2 }
 0x34e   :  { %742 = vpow2.f32 %v494_v3 }
 0x34f   :  { %744 = vpow2.f32 %v511_v5 }
 0x353   :  { %v739_v6 = vpop.eup %738 }
 0x354   :  { %462 = vrot.lane.b32.xlu0 %v739_v6, %s755_s6 }
 0x357   :  { %v741_v7 = vpop.eup %740 }
 0x358   :  { %480 = vrot.lane.b32.xlu1 %v741_v7, %s756_s12  ;;  %v743_v8 = vpop.eup %742 }
 0x359   :  { %v745_v9 = vpop.eup %744 }
 0x35c   :  { %497 = vrot.lane.b32.xlu1 %v743_v8, %s757_s13 }
 0x360   :  { %514 = vrot.lane.b32.xlu1 %v745_v9, %s758_s14 }
 0x3c6   :  { %v463_v10 = vpop.permute.xlu0 %462 }
 0x3c7   :  { %v466_v11 = vsel %vm465_vm9, %v463_v10, 0.0 }
 0x3c8   :  { %467 = vadd.xlane.f32.xlu0 %v466_v11 }
 0x3ca   :  { %v481_v12 = vpop.permute.xlu1 %480 }
 0x3cb   :  { %v483_v13 = vsel %vm465_vm9, %v481_v12, 0.0 }
 0x3cc   :  { %484 = vadd.xlane.f32.xlu1 %v483_v13 }
 0x3ce   :  { %v498_v14 = vpop.permute.xlu1 %497 }
 0x3cf   :  { %v500_v15 = vsel %vm465_vm9, %v498_v14, 0.0 }
 0x3d0   :  { %501 = vadd.xlane.f32.xlu0 %v500_v15 }
 0x3d2   :  { %v515_v16 = vpop.permute.xlu1 %514 }
 0x3d3   :  { %v517_v17 = vsel %vm465_vm9, %v515_v16, 0.0 }
 0x3d4   :  { %518 = vadd.xlane.f32.xlu0 %v517_v17 }
 0x455   :  { %v468_v18 = vpop.xlane.xlu0 %467 }
 0x456   :  { %746 = vrcp.f32 %v468_v18 }
 0x459   :  { %v485_v19 = vpop.xlane.xlu1 %484 }
 0x45a   :  { %748 = vrcp.f32 %v485_v19 }
 0x45d   :  { %v502_v20 = vpop.xlane.xlu0 %501 }
 0x45e   :  { %750 = vrcp.f32 %v502_v20 }
 0x460   :  { %v747_v21 = vpop.eup %746 }
 0x461   :  { %v470_v22 = vmul.f32 %v747_v21, %v739_v6  ;;  %v519_v23 = vpop.xlane.xlu0 %518 }
 0x462   :  { %752 = vrcp.f32 %v519_v23 }
 0x463   :  { %471 = vst.msk [vmem:[%s1138_s7] sm:$0xf] %vm454_vm5, %v470_v22 }
 0x464   :  { %v749_v24 = vpop.eup %748 }
 0x465   :  { %v487_v25 = vmul.f32 %v749_v24, %v741_v7 }
 0x467   :  { %488 = vst.msk [vmem:[%s1138_s7] sm:$0xf] %vm472_vm8, %v487_v25 }
 0x468   :  { %v751_v26 = vpop.eup %750 }
 0x469   :  { %v504_v27 = vmul.f32 %v751_v26, %v743_v8 }
 0x46b   :  { %505 = vst.msk [vmem:[%s1138_s7] sm:$0xf] %vm489_vm4, %v504_v27 }
 0x46c   :  { %v753_v28 = vpop.eup %752 }
 0x46d   :  { %v521_v29 = vmul.f32 %v753_v28, %v745_v9 }
 0x46f   :  { %522 = vst.msk [vmem:[%s1138_s7] sm:$0xf] %vm506_vm7, %v521_v29 }

// kernel: forward.2
= control target key start
LH: loop header
LB: loop body
LE: loop exit
PB: predicated region body
PF: predicated region fallthrough
CT: control target
= control target key end

     0   :  { %s1124_s18 = smov 0   ;;  %s1332_s0 = inlined_call_operand.vmem [shape: f32[4,10,40], index: 0, kind: input, shape index: {}]   ;;  %s1333_s1 = inlined_call_operand.vmem [shape: f32[3,40,80], index: 1, kind: input, shape index: {}]   ;;  %s1334_s2 = inlined_call_operand.vmem [shape: f32[1,80], index: 2, kind: input, shape index: {}]   ;;  %s1335_s3 = inlined_call_operand.vmem [shape: f32[3,80,64], index: 3, kind: input, shape index: {}]   ;;  %s1336_s4 = inlined_call_operand.vmem [shape: f32[1,64], index: 4, kind: input, shape index: {}]   ;;  %s1337_s5 = inlined_call_operand.vmem [shape: f32[4,8,64], index: 5, kind: output, shape index: {}]  }
   0x1 LB: > { %s801_s19 = sadd.s32 4294967295, %s1089_s18   ;;  %p805_p0 = scmp.ge.s32.totalorder %s1089_s18, 1  ;;  %s1089_s18 = sphi %s1124_s18, %s15_s18  }
   0x2   : > { %p187_p1 = scmp.lt.s32.totalorder %s1089_s18, 5 }
   0x4   : > { %p188_p2 = pnand %p805_p0, %p187_p1 }
   0x5   : > { %v809_v0 = vld [vmem:[%s1333_s1 + $0x28] sm:$0xff] (!%p188_p2)  ;;  %v810_v1 = vld [vmem:[%s1333_s1 + $0x30] sm:$0xff] (!%p188_p2)  ;;  %v224_v2 = vld [vmem:[%s1333_s1] sm:$0xff] (!%p188_p2)  ;;  %v1091_v3 = vmov (!%p188_p2), 0.0|0.0   ;;  %p214_p3 = scmp.lt.s32.totalorder (!%p188_p2), %s801_s19, 3  ;;  %vm1092_vm0 = vmmov (!%p188_p2), 0  }
   0x6   : > { %191 = sbr.rel (%p188_p2) target bundleno = 495 (0x1ef), region = 40  ;;  %1009 = vmatprep.subr.bf16.mxu0 (!%p188_p2), %v1091_v3  ;;  %v1010_v4 = vpack.c.bf16 (!%p188_p2), %v810_v1, %v809_v0  ;;  %1015 = vmatprep.subr.bf16.mxu1 (!%p188_p2), %v1091_v3  ;;  %v225_v5 = vld [vmem:[%s1333_s1 + $0x8] sm:$0xff] (!%p188_p2)  ;;  %v811_v6 = vld [vmem:[%s1333_s1 + $0x38] sm:$0xff] (!%p188_p2)  ;;  %v812_v7 = vld [vmem:[%s1333_s1 + $0x40] sm:$0xff] (!%p188_p2)  ;;  %v1093_v11 = vmov (!%p188_p2), 0.0   ;;  %vm236_vm1 = vcmask (!%p188_p2), 326656  }
   0x7   : > { %v1016_v8 = vpack.c.bf16 (!%p188_p2), %v225_v5, %v224_v2  ;;  %v226_v9 = vld [vmem:[%s1333_s1 + $0x10] sm:$0xff] (!%p188_p2)  ;;  %v227_v10 = vld [vmem:[%s1333_s1 + $0x18] sm:$0xff] (!%p188_p2)  ;;  %911 = vmatprep.mubr.msk.f32.mxu0 (!%p188_p2), %vm1092_vm0, %v1093_v11  ;;  %924 = vmatprep.mubr.msk.f32.mxu1 (!%p188_p2), %vm1092_vm0, %v1093_v11  ;;  %v1013_v12 = vpack.c.bf16 (!%p188_p2), %v812_v7, %v811_v6  ;;  %v813_v16 = vld [vmem:[%s1333_s1 + $0x48] sm:$0xff] (!%p188_p2)  ;;  %vm475_vm2 = vcmask (!%p188_p2), 654336   ;;  %vm477_vm3 = vcmask (!%p188_p2), 648192  }
   0x8   : > { %1011 = vmatpush3.bf16.msra.mxu0 (!%p188_p2), %v1010_v4  ;;  %v1019_v13 = vpack.c.bf16 (!%p188_p2), %v227_v10, %v226_v9  ;;  %v816_v14 = vld [vmem:[%s1333_s1 + $0x50] sm:$0xff] (!%p188_p2)  ;;  %v817_v15 = vld [vmem:[%s1333_s1 + $0x58] sm:$0xff] (!%p188_p2)  ;;  %v228_v18 = vld [vmem:[%s1333_s1 + $0x20] sm:$0xff] (!%p188_p2)  ;;  %476 = vst.msk [vmem:[#allocation2] sm:$0xff] (!%p188_p2), %vm475_vm2, %v1093_v11  ;;  %vm746_vm6 = vcmask (!%p188_p2), 523264  }
   0x9   : > { %1017 = vmatpush3.bf16.msra.mxu1 (!%p188_p2), %v1016_v8  ;;  %1012 = vmatprep.subr.bf16.mxu0 (!%p188_p2), %v1091_v3  ;;  %v1022_v20 = vpack.c.bf16 (!%p188_p2), %v817_v15, %v816_v14  ;;  %v818_v21 = vld [vmem:[%s1333_s1 + $0x60] sm:$0xff] (!%p188_p2)  ;;  %v819_v22 = vld [vmem:[%s1333_s1 + $0x68] sm:$0xff] (!%p188_p2)  ;;  %v820_v24 = vld [vmem:[%s1333_s1 + $0x70] sm:$0xff] (!%p188_p2)  ;;  %478 = vst.msk [vmem:[#allocation2 + $0x8] sm:$0x3] (!%p188_p2), %vm477_vm3, %v1093_v11 }
   0xa   : > { %1018 = vmatprep.subr.bf16.mxu1 (!%p188_p2), %v1091_v3  ;;  %v1025_v23 = vpack.c.bf16 (!%p188_p2), %v819_v22, %v818_v21  ;;  %v823_v26 = vld [vmem:[%s1335_s3 + $0x50] sm:$0xff] (!%p188_p2)  ;;  %v824_v27 = vld [vmem:[%s1335_s3 + $0x58] sm:$0xff] (!%p188_p2)  ;;  %v481_v28 = vld [vmem:[%s1335_s3] sm:$0xff] (!%p188_p2) }
   0xb   : > { %v1028_v29 = vpack.c.bf16 (!%p188_p2), %v824_v27, %v823_v26  ;;  %v482_v30 = vld [vmem:[%s1335_s3 + $0x8] sm:$0xff] (!%p188_p2)  ;;  %v825_v32 = vld [vmem:[%s1335_s3 + $0x60] sm:$0xff] (!%p188_p2)  ;;  %v483_v35 = vld [vmem:[%s1335_s3 + $0x10] sm:$0xff] (!%p188_p2) }
   0xc   : > { %1014 = vmatpush3.bf16.msra.mxu0 (!%p188_p2), %v1013_v12  ;;  %v1043_v31 = vpack.c.bf16 (!%p188_p2), %v482_v30, %v481_v28  ;;  %v826_v33 = vld [vmem:[%s1335_s3 + $0x68] sm:$0xff] (!%p188_p2)  ;;  %v484_v36 = vld [vmem:[%s1335_s3 + $0x18] sm:$0xff] (!%p188_p2)  ;;  %v827_v38 = vld [vmem:[%s1335_s3 + $0x70] sm:$0xff] (!%p188_p2) }
   0xd   : > { %s1339_s19 = smov (!%p214_p3, %s801_s19), 3  ;;  %1020 = vmatpush3.bf16.msra.mxu1 %v1019_v13  ;;  %909 = vmatprep.subr.mxu0 %v1093_v11  ;;  %v1031_v34 = vpack.c.bf16 %v826_v33, %v825_v32  ;;  %v1046_v37 = vpack.c.bf16 %v484_v36, %v483_v35  ;;  %v828_v39 = vld [vmem:[%s1335_s3 + $0x78] sm:$0xff]  ;;  %v485_v41 = vld [vmem:[%s1335_s3 + $0x20] sm:$0xff]  ;;  %v486_v42 = vld [vmem:[%s1335_s3 + $0x28] sm:$0xff] }
   0xe   : > { %s849_s11 = sshll.u32 %s1339_s19, 4  ;;  %922 = vmatprep.subr.mxu1 %v1093_v11  ;;  %v1034_v40 = vpack.c.bf16 %v828_v39, %v827_v38  ;;  %v1049_v43 = vpack.c.bf16 %v486_v42, %v485_v41  ;;  %v829_v44 = vld [vmem:[%s1335_s3 + $0x80] sm:$0xff]  ;;  %v830_v45 = vld [vmem:[%s1335_s3 + $0x88] sm:$0xff]  ;;  %v487_v47 = vld [vmem:[%s1335_s3 + $0x30] sm:$0xff]  ;;  %s808_s26 = sshll.u32 %s1339_s19, 3 }
   0xf   : > { %s218_s14 = scalar_lea.vmem %s1332_s0, %s849_s11  ;;  %v1037_v46 = vpack.c.bf16 %v830_v45, %v829_v44  ;;  %v488_v48 = vld [vmem:[%s1335_s3 + $0x38] sm:$0xff]  ;;  %v831_v50 = vld [vmem:[%s1335_s3 + $0x90] sm:$0xff]  ;;  %v489_v52 = vld [vmem:[%s1335_s3 + $0x40] sm:$0xff]  ;;  %s222_s29 = scalar_lea.vmem %s1337_s5, %s808_s26 }
  0x10   : > { %v229_v17 = vld [vmem:[%s218_s14 + $0x1] sm:$0xff]  ;;  %910 = vmatpush3.msra.mxu0 %v813_v16  ;;  %v1052_v49 = vpack.c.bf16 %v488_v48, %v487_v47  ;;  %v832_v51 = vld [vmem:[%s1335_s3 + $0x98] sm:$0xff]  ;;  %v822_v62 = vld [vmem:[%s1334_s2] ss:$0 sm:$0xff] }
  0x11   : > { %v223_v19 = vld [vmem:[%s218_s14] sm:$0xff]  ;;  %912 = vmatmul.mubr.msk.f32.vlgmr.msra.gmra.mrb[0].mxu0 %vm236_vm1, %v229_v17  ;;  %923 = vmatpush3.msra.mxu1 %v228_v18  ;;  %v1040_v53 = vpack.c.bf16 %v832_v51, %v831_v50  ;;  %v490_v54 = vld [vmem:[%s1335_s3 + $0x48] sm:$0xff]  ;;  %v837_v8 = vld [vmem:[%s1335_s3 + $0xb0] sm:$0xff] }
  0x12   : > { %1021 = vmatprep.subr.bf16.mxu0 %v1091_v3  ;;  %925 = vmatmul.mubr.msk.f32.vlgmr.msra.gmra.mrb[0].mxu1 %vm236_vm1, %v223_v19  ;;  %v383_v25 = vld [vmem:[%s218_s14 + $0x2] sm:$0xff]  ;;  %v1055_v55 = vpack.c.bf16 %v490_v54, %v489_v52  ;;  %v838_v9 = vld [vmem:[%s1335_s3 + $0xb8] sm:$0xff]  ;;  %v841_v17 = vld [vmem:[%s1335_s3 + $0xd0] sm:$0xff] }
  0x13   : > { %1023 = vmatpush3.bf16.msra.mxu0 %v1022_v20  ;;  %937 = vmatprep.mubr.msk.f32.mxu0 %vm1092_vm0, %v1093_v11  ;;  %v835_v5 = vld [vmem:[%s1335_s3 + $0xa0] sm:$0xff]  ;;  %v836_v6 = vld [vmem:[%s1335_s3 + $0xa8] sm:$0xff]  ;;  %v1061_v13 = vpack.c.bf16 %v838_v9, %v837_v8 }
  0x14   : > { %1024 = vmatprep.subr.bf16.mxu0 %v1091_v3  ;;  %1027 = vmatprep.subr.bf16.mxu1 %v1091_v3  ;;  %v1058_v7 = vpack.c.bf16 %v836_v6, %v835_v5  ;;  %v839_v14 = vld [vmem:[%s1335_s3 + $0xc0] sm:$0xff]  ;;  %v840_v15 = vld [vmem:[%s1335_s3 + $0xc8] sm:$0xff] }
  0x15   : > { %960 = vmatprep.mubr.msk.f32.mxu1 %vm1092_vm0, %v1093_v11  ;;  %1029 = vmatpush3.bf16.msra.mxu1 %v1028_v29  ;;  %v1064_v16 = vpack.c.bf16 %v840_v15, %v839_v14  ;;  %v843_v19 = vld [vmem:[%s1335_s3 + $0xe0] sm:$0xff]  ;;  %v844_v20 = vld [vmem:[%s1335_s3 + $0xe8] sm:$0xff] }
  0x16   : > { %1030 = vmatprep.subr.bf16.mxu1 %v1091_v3  ;;  %v1070_v21 = vpack.c.bf16 %v844_v20, %v843_v19  ;;  %v846_v29 = vld [vmem:[%s1336_s4] ss:$0 sm:$0xff] }
  0x17   : > { %1026 = vmatpush3.bf16.msra.mxu0 %v1025_v23 }
  0x18   : > { %935 = vmatprep.subr.mxu0 %v1093_v11 }
  0x19   : > { %1032 = vmatpush3.bf16.msra.mxu1 %v1031_v34 }
  0x1a   : > { %1033 = vmatprep.subr.bf16.mxu1 %v1091_v3 }
  0x1b   : > { %936 = vmatpush3.msra.mxu0 %v820_v24 }
  0x1c   : > { %938 = vmatmul.mubr.msk.f32.vlgmr.msra.gmra.mrb[2].mxu0 %vm236_vm1, %v383_v25  ;;  %1042 = vmatprep.subr.bf16.mxu0 %v1091_v3 }
  0x1d   : > { %983 = vmatprep.mubr.msk.f32.mxu0 %vm1092_vm0, %v1093_v11  ;;  %1044 = vmatpush3.bf16.msra.mxu0 %v1043_v31 }
  0x1e   : > { %1045 = vmatprep.subr.bf16.mxu0 %v1091_v3  ;;  %1035 = vmatpush3.bf16.msra.mxu1 %v1034_v40 }
  0x1f   : > { %1036 = vmatprep.subr.bf16.mxu1 %v1091_v3 }
  0x21   : > { %1047 = vmatpush3.bf16.msra.mxu0 %v1046_v37 }
  0x22   : > { %1048 = vmatprep.subr.bf16.mxu0 %v1091_v3  ;;  %1038 = vmatpush3.bf16.msra.mxu1 %v1037_v46 }
  0x23   : > { %1039 = vmatprep.subr.bf16.mxu1 %v1091_v3 }
  0x25   : > { %1050 = vmatpush3.bf16.msra.mxu0 %v1049_v43 }
  0x26   : > { %1051 = vmatprep.subr.bf16.mxu0 %v1091_v3  ;;  %1041 = vmatpush3.bf16.msra.mxu1 %v1040_v53 }
  0x27   : > { %1057 = vmatprep.subr.bf16.mxu1 %v1091_v3 }
  0x29   : > { %1053 = vmatpush3.bf16.msra.mxu0 %v1052_v49 }
  0x2a   : > { %1054 = vmatprep.subr.bf16.mxu0 %v1091_v3 }
  0x2d   : > { %1056 = vmatpush3.bf16.msra.mxu0 %v1055_v55 }
  0xe4   : > { %v306_v56 = vpop.f32.mrb[0].mxu0 }
  0xe5   : > { %v913_v57 = vpop.f32.mrb[1].mxu0  ;;  %v379_v58 = vpop.f32.mrb[0].mxu1 }
  0xe6   : > { %v380_v59 = vadd.f32 %v379_v58, %v306_v56  ;;  %v926_v60 = vpop.f32.mrb[1].mxu1 }
  0xef   : > { %v459_v61 = vpop.f32.mrb[2].mxu0 }
  0xf0   : > { %v463_v63 = vadd.f32 %v459_v61, %v380_v59  ;;  %v939_v0 = vpop.f32.mrb[3].mxu0 }
  0xf2   : > { %v471_v1 = vadd.f32 %v822_v62, %v463_v63 }
  0xf4   : > { %vm472_vm4 = vcmp.ge.f32.partialorder %v471_v1, 0.0  ;;  %v473_v2 = vmul.f32 0.01, %v471_v1 }
  0xf6   : > { %v474_v4 = vsel %vm472_vm4, %v471_v1, %v473_v2 }
  0xf7   : > { %479 = vst.msk [vmem:[#allocation2 + $0x1] sm:$0xff] %vm475_vm2, %v474_v4 }
  0xfe   : > { %v491_v10 = vld [vmem:[#allocation2 + $0x1] sm:$0xff] }
  0xff   : > { %v480_v12 = vld [vmem:[#allocation2] sm:$0xff]  ;;  %961 = vmatmul.mubr.msk.f32.vlgmr.msra.gmra.mrb[2].mxu1 %vm475_vm2, %v491_v10 }
 0x100   : > { %984 = vmatmul.mubr.msk.f32.vlgmr.msra.gmra.mrb[4].mxu0 %vm475_vm2, %v480_v12  ;;  %1059 = vmatpush3.bf16.msra.mxu1 %v1058_v7  ;;  %v649_v22 = vld [vmem:[#allocation2 + $0x2] sm:$0xff] }
 0x101   : > { %1006 = vmatprep.mubr.msk.f32.mxu1 %vm1092_vm0, %v1093_v11  ;;  %1060 = vmatprep.subr.bf16.mxu1 %v1091_v3  ;;  %v842_v11 = vld [vmem:[%s1335_s3 + $0xd8] sm:$0xff] }
 0x102   : > { %v1067_v18 = vpack.c.bf16 %v842_v11, %v841_v17 }
 0x104   : > { %1062 = vmatpush3.bf16.msra.mxu1 %v1061_v13 }
 0x105   : > { %1063 = vmatprep.subr.bf16.mxu1 %v1091_v3 }
 0x108   : > { %1065 = vmatpush3.bf16.msra.mxu1 %v1064_v16 }
 0x109   : > { %1066 = vmatprep.subr.bf16.mxu1 %v1091_v3 }
 0x10c   : > { %1068 = vmatpush3.bf16.msra.mxu1 %v1067_v18 }
 0x10d   : > { %1069 = vmatprep.subr.bf16.mxu1 %v1091_v3 }
 0x110   : > { %1071 = vmatpush3.bf16.msra.mxu1 %v1070_v21 }
 0x113   : > { %1007 = vmatmul.mubr.msk.f32.vlgmr.msra.gmra.mrb[4].mxu1 %vm475_vm2, %v649_v22 }
 0x1d2   : > { %v572_v23 = vpop.f32.mrb[2].mxu1 }
 0x1d3   : > { %v645_v24 = vpop.f32.mrb[4].mxu0  ;;  %v962_v26 = vpop.f32.mrb[3].mxu1 }
 0x1d4   : > { %v646_v25 = vadd.f32 %v645_v24, %v572_v23  ;;  %v985_v27 = vpop.f32.mrb[5].mxu0 }
 0x1e6   : > { %v730_v28 = vpop.f32.mrb[4].mxu1 }
 0x1e7   : > { %v734_v30 = vadd.f32 %v730_v28, %v646_v25  ;;  %v1008_v31 = vpop.f32.mrb[5].mxu1 }
 0x1e9   : > { %v742_v32 = vadd.f32 %v846_v29, %v734_v30 }
 0x1eb   : > { %vm743_vm5 = vcmp.ge.f32.partialorder %v742_v32, 0.0  ;;  %v744_v3 = vmul.f32 0.01, %v742_v32 }
 0x1ed   : > { %v745_v33 = vsel %vm743_vm5, %v742_v32, %v744_v3 }
 0x1ee   : > { %747 = vst.msk [vmem:[%s222_s29] sm:$0xff] %vm746_vm6, %v745_v33 }
 0x1ef PF: > { %s15_s18 = sadd.s32 1, %s1089_s18  }
 0x1f0   : > { %p12_p4 = scmp.ge.s32.totalorder %s15_s18, 6  }
 0x1f2   :  { %14 = sbr.rel (!%p12_p4) target bundleno = 1 (0x1), region = 74 }

</bundles_post_ra>
